<compile_context>
chip_gen: v7x
topology: tpu7x:2x2x1
jax: 0.10.0
libtpu: 0.0.40
codegen_flags: <defaults>
</compile_context>

<pallas_src>
import math
from functools import partial

import jax
import jax.numpy as jnp
import numpy as np
from jax.experimental import pallas as pl
from jax.experimental.pallas import tpu as pltpu


# ---------------------------------------------------------------------------
# Parameter / filter setup (host-side numpy — mirrors gauss1d in the module)
# ---------------------------------------------------------------------------
def gauss1d(sigma_value, std_devs=None):
    """Normalized 1-D Gaussian filter taps (K,) as host-side numpy constants."""
    # TODO(synk): sigma must be a static Python float here — the kernel width
    # K = 2*ceil(std_devs*sigma)+1 is baked at trace time, so gradients w.r.t.
    # the "learned" sigma do not flow through this JAX port.
    std_devs = std_devs or 2                       # matches the PyTorch default
    half_size = max(1, int(math.ceil(float(sigma_value) * std_devs)))
    kernel_size = 2 * half_size + 1
    xs = np.linspace(-half_size, half_size, kernel_size, dtype=np.float32)
    f = np.exp(-(xs ** 2) / (2.0 * np.float32(sigma_value) ** 2))
    return (f / f.sum()).astype(np.float32)


def _banded_matrix(taps, W):
    """(W, W) matrix F such that x @ F == zero-padded 'same' 1-D conv of rows."""
    K = len(taps)
    P = K // 2
    F = np.zeros((W, W), dtype=np.float32)
    for j in range(W):
        for k in range(K):
            i = j + k - P
            if 0 <= i < W:
                F[i, j] = taps[k]
    return F


# ---------------------------------------------------------------------------
# Pallas kernel: H-axis tap conv (streamed from ref) + W-axis banded MXU matmul
# ---------------------------------------------------------------------------
def _blur_kernel(x_ref, fh_ref, o_ref, pad_ref, *, taps, H, W, P):
    # x_ref:   (TB, H, W) input planes (VMEM tile)
    # fh_ref:  (W, W) f32 banded horizontal-conv matrix (VMEM, grid-invariant)
    # o_ref:   (TB, H, W) output planes
    # pad_ref: (TB, H+2P, W) scratch in x.dtype — padded in H only
    K = len(taps)
    TB = x_ref.shape[0]

    # Zero ONLY the 2*P halo rows, then copy the tile into the interior.
    # (No full-scratch zeroing pass; no lane padding, so stores are aligned.)
    zero_rows = jnp.zeros((TB, P, W), dtype=pad_ref.dtype)
    pad_ref[:, 0:P, :] = zero_rows
    pad_ref[:, H + P:H + 2 * P, :] = zero_rows
    pad_ref[:, P:P + H, :] = x_ref[...].astype(pad_ref.dtype)

    # Vertical (H-axis) conv: K sublane-offset reads straight from the ref;
    # taps are compile-time Python floats (splat constants).  k=0 initializes.
    acc = taps[0] * pad_ref[:, 0:H, :].astype(jnp.float32)
    for k in range(1, K):
        acc = acc + taps[k] * pad_ref[:, k:k + H, :].astype(jnp.float32)

    # Horizontal (W-axis) conv as a single MXU matmul against the banded
    # (W, W) filter matrix.  f32 accumulate + HIGHEST precision keeps the
    # result at full f32 fidelity vs. the tap-sum reference.
    out2d = jnp.dot(
        acc.reshape(TB * H, W),
        fh_ref[...],
        preferred_element_type=jnp.float32,
        precision=jax.lax.Precision.HIGHEST,
    )
    o_ref[...] = out2d.reshape(TB, H, W).astype(o_ref.dtype)


def _pick_plane_batch(N, H, W, P):
    """Largest divisor of N fitting a ~3 MiB working set, preferring >=8 steps."""
    Hp = H + 2 * P
    # f32 worst-case bytes live per plane per grid step: double-buffered input
    # and output tiles, the H-padded scratch, the live f32 accumulator and the
    # live f32 matmul result (intermediates were omitted before -> v7x risk).
    per_plane = 4 * (2 * H * W + 2 * H * W + Hp * W + H * W + H * W)
    budget = 3 << 20                     # HBM roofline is flat by ~1-4 MiB tiles
    cap = max(1, budget // per_plane)
    divisors = [d for d in range(1, N + 1) if N % d == 0 and d <= cap]
    if not divisors:
        return 1
    # Prefer >= 8 total grid steps (>= 4 per TensorCore on v7x megacore) so the
    # input DMA of step i+1 overlaps the compute of step i; degrade gracefully.
    for min_steps in (8, 4, 2, 1):
        pref = [d for d in divisors if N // d >= min_steps]
        if pref:
            return max(pref)
    return 1


# ---------------------------------------------------------------------------
# Wrapper ≡ Blur2d.forward / blur2d_sphere / conv2d_mono_sep
# ---------------------------------------------------------------------------
def blur2d(x, sigma_value, std_devs=None):
    """x: (B, C, H, W) float, NCHW.  Returns same-shape blurred tensor."""
    B, C, H, W = x.shape
    f_np = gauss1d(sigma_value, std_devs)               # (K,) numpy constants
    K = int(f_np.shape[0])
    P = K // 2
    taps = tuple(float(v) for v in f_np)                # baked into the kernel
    fh = jnp.asarray(_banded_matrix(taps, W))           # (W, W) banded filter

    N = B * C
    xf = x.reshape(N, H, W)                             # free reshape, no copy

    TB = _pick_plane_batch(N, H, W, P)
    grid = (N // TB,)

    kernel = partial(_blur_kernel, taps=taps, H=H, W=W, P=P)
    out = pl.pallas_call(
        kernel,
        out_shape=jax.ShapeDtypeStruct((N, H, W), x.dtype),
        grid_spec=pltpu.PrefetchScalarGridSpec(
            num_scalar_prefetch=0,
            grid=grid,
            in_specs=[
                pl.BlockSpec((TB, H, W), lambda i: (i, 0, 0)),
                pl.BlockSpec((W, W), lambda i: (0, 0)),   # grid-invariant filter
            ],
            out_specs=pl.BlockSpec((TB, H, W), lambda i: (i, 0, 0)),
            scratch_shapes=[pltpu.VMEM((TB, H + 2 * P, W), x.dtype)],
        ),
        compiler_params=pltpu.CompilerParams(
            dimension_semantics=("parallel",),
            vmem_limit_bytes=40 * 1024 * 1024,           # <= v7x 64 MiB physical
        ),
    )(xf, fh)
    return out.reshape(B, C, H, W)


# Plain-JAX reference (same math, no Pallas) for verification.
def blur2d_ref(x, sigma_value, std_devs=None):
    B, C, H, W = x.shape
    f = jnp.asarray(gauss1d(sigma_value, std_devs))
    K = int(f.shape[0])
    P = K // 2
    xp = jnp.pad(x.astype(jnp.float32), ((0, 0), (0, 0), (P, P), (P, P)))
    tmp = sum(f[k] * xp[:, :, k:k + H, :] for k in range(K))
    out = sum(f[k] * tmp[:, :, :, k:k + W] for k in range(K))
    return out.astype(x.dtype)


class Blur2d:
    """Blur by spherical Gaussian with (deterministically initialized) sigma."""

    def __init__(self, sigma):
        self.sigma = float(sigma)       # scalar parameter (static in this port)

    def __call__(self, x):
        return blur2d(x, self.sigma)


if __name__ == "__main__":
    key = jax.random.PRNGKey(0)
    B, C, H, W = 2, 4, 16, 16
    x = jax.random.normal(key, (B, C, H, W), dtype=jnp.float32)

    sigma_init = 1.0                    # nn.Parameter(sigma) -> half_size=2, K=5
    module = Blur2d(sigma_init)

    y = module(x)
    y = jax.block_until_ready(y)

    y_ref = jax.block_until_ready(blur2d_ref(x, sigma_init))
    np.testing.assert_allclose(np.asarray(y), np.asarray(y_ref),
                               rtol=1e-5, atol=1e-5)
    assert y.shape == (B, C, H, W) and y.dtype == x.dtype
    print("KERNEL_OK")
</pallas_src>

<mosaic_0001>
module attributes {stable_mosaic.version = 11 : i64} {
  func.func @_blur_kernel(%arg0: i32, %arg1: memref<1x16x16xf32, #tpu.memory_space<vmem>>, %arg2: memref<16x16xf32, #tpu.memory_space<vmem>>, %arg3: memref<1x16x16xf32, #tpu.memory_space<vmem>>, %arg4: memref<1x20x16xf32, #tpu.memory_space<vmem>>) attributes {dimension_semantics = [#tpu.dimension_semantics<parallel>], iteration_bounds = array<i64: 8>, scalar_prefetch = 0 : i64, scratch_operands = 1 : i64, tpu.core_type = #tpu.core_type<tc>, window_params = [{transform_indices = @transform_0, window_bounds = array<i64: 1, 16, 16>}, {pipeline_mode = #tpu.pipeline_mode<synchronous>, transform_indices = @transform_1, window_bounds = array<i64: 16, 16>}, {transform_indices = @transform_2, window_bounds = array<i64: 1, 16, 16>}]} {
    %cst = arith.constant 0.000000e+00 : f32
    %0 = vector.broadcast %cst : f32 to vector<1x2x16xf32>
    %c0 = arith.constant 0 : index
    %c0_0 = arith.constant 0 : index
    %c0_1 = arith.constant 0 : index
    %1 = vector.load %arg4[%c0, %c0_0, %c0_1] : memref<1x20x16xf32, #tpu.memory_space<vmem>>, vector<1x2x16xf32>
    tpu.vector_store %arg4[%c0, %c0_0, %c0_1], %0 {strides = array<i32>} : memref<1x20x16xf32, #tpu.memory_space<vmem>>, vector<1x2x16xf32>,
    %c0_2 = arith.constant 0 : index
    %c18 = arith.constant 18 : index
    %c0_3 = arith.constant 0 : index
    %2 = vector.load %arg4[%c0_2, %c18, %c0_3] : memref<1x20x16xf32, #tpu.memory_space<vmem>>, vector<1x2x16xf32>
    tpu.vector_store %arg4[%c0_2, %c18, %c0_3], %0 {strides = array<i32>} : memref<1x20x16xf32, #tpu.memory_space<vmem>>, vector<1x2x16xf32>,
    %c0_4 = arith.constant 0 : index
    %c0_5 = arith.constant 0 : index
    %c0_6 = arith.constant 0 : index
    %3 = vector.load %arg1[%c0_4, %c0_5, %c0_6] : memref<1x16x16xf32, #tpu.memory_space<vmem>>, vector<1x16x16xf32>
    %c0_7 = arith.constant 0 : index
    %c2 = arith.constant 2 : index
    %c0_8 = arith.constant 0 : index
    %4 = vector.load %arg4[%c0_7, %c2, %c0_8] : memref<1x20x16xf32, #tpu.memory_space<vmem>>, vector<1x16x16xf32>
    tpu.vector_store %arg4[%c0_7, %c2, %c0_8], %3 {strides = array<i32>} : memref<1x20x16xf32, #tpu.memory_space<vmem>>, vector<1x16x16xf32>,
    %c0_9 = arith.constant 0 : index
    %c0_10 = arith.constant 0 : index
    %c0_11 = arith.constant 0 : index
    %5 = vector.load %arg4[%c0_9, %c0_10, %c0_11] : memref<1x20x16xf32, #tpu.memory_space<vmem>>, vector<1x16x16xf32>
    %cst_12 = arith.constant 0.0544886887 : f32
    %6 = vector.broadcast %cst_12 : f32 to vector<1x16x16xf32>
    %7 = arith.mulf %6, %5 : vector<1x16x16xf32>
    %c0_13 = arith.constant 0 : index
    %c1 = arith.constant 1 : index
    %c0_14 = arith.constant 0 : index
    %8 = vector.load %arg4[%c0_13, %c1, %c0_14] : memref<1x20x16xf32, #tpu.memory_space<vmem>>, vector<1x16x16xf32>
    %cst_15 = arith.constant 0.244201362 : f32
    %9 = vector.broadcast %cst_15 : f32 to vector<1x16x16xf32>
    %10 = arith.mulf %9, %8 : vector<1x16x16xf32>
    %11 = arith.addf %7, %10 : vector<1x16x16xf32>
    %c0_16 = arith.constant 0 : index
    %c2_17 = arith.constant 2 : index
    %c0_18 = arith.constant 0 : index
    %12 = vector.load %arg4[%c0_16, %c2_17, %c0_18] : memref<1x20x16xf32, #tpu.memory_space<vmem>>, vector<1x16x16xf32>
    %cst_19 = arith.constant 0.402619958 : f32
    %13 = vector.broadcast %cst_19 : f32 to vector<1x16x16xf32>
    %14 = arith.mulf %13, %12 : vector<1x16x16xf32>
    %15 = arith.addf %11, %14 : vector<1x16x16xf32>
    %c0_20 = arith.constant 0 : index
    %c3 = arith.constant 3 : index
    %c0_21 = arith.constant 0 : index
    %16 = vector.load %arg4[%c0_20, %c3, %c0_21] : memref<1x20x16xf32, #tpu.memory_space<vmem>>, vector<1x16x16xf32>
    %cst_22 = arith.constant 0.244201362 : f32
    %17 = vector.broadcast %cst_22 : f32 to vector<1x16x16xf32>
    %18 = arith.mulf %17, %16 : vector<1x16x16xf32>
    %19 = arith.addf %15, %18 : vector<1x16x16xf32>
    %c0_23 = arith.constant 0 : index
    %c4 = arith.constant 4 : index
    %c0_24 = arith.constant 0 : index
    %20 = vector.load %arg4[%c0_23, %c4, %c0_24] : memref<1x20x16xf32, #tpu.memory_space<vmem>>, vector<1x16x16xf32>
    %cst_25 = arith.constant 0.0544886887 : f32
    %21 = vector.broadcast %cst_25 : f32 to vector<1x16x16xf32>
    %22 = arith.mulf %21, %20 : vector<1x16x16xf32>
    %23 = arith.addf %19, %22 : vector<1x16x16xf32>
    %24 = vector.shape_cast %23 : vector<1x16x16xf32> to vector<16x16xf32>
    %c0_26 = arith.constant 0 : index
    %c0_27 = arith.constant 0 : index
    %25 = vector.load %arg2[%c0_26, %c0_27] : memref<16x16xf32, #tpu.memory_space<vmem>>, vector<16x16xf32>
    %cst_28 = arith.constant dense<0.000000e+00> : vector<16x16xf32>
    %26 = tpu.matmul %24, %25, %cst_28 {dimension_numbers = #tpu.dot_dimension_numbers<[1], [0], [0], [1], [0, 0, 1, 1], [], []>, precision = #tpu.contract_precision<fp32>} : vector<16x16xf32>, vector<16x16xf32>, vector<16x16xf32> -> vector<16x16xf32>
    %27 = vector.shape_cast %26 : vector<16x16xf32> to vector<1x16x16xf32>
    %c0_29 = arith.constant 0 : index
    %c0_30 = arith.constant 0 : index
    %c0_31 = arith.constant 0 : index
    %28 = vector.load %arg3[%c0_29, %c0_30, %c0_31] : memref<1x16x16xf32, #tpu.memory_space<vmem>>, vector<1x16x16xf32>
    tpu.vector_store %arg3[%c0_29, %c0_30, %c0_31], %27 {strides = array<i32>} : memref<1x16x16xf32, #tpu.memory_space<vmem>>, vector<1x16x16xf32>,
    return
  }
  func.func @transform_0(%arg0: i32) -> (i32, i32, i32) {
    %c0_i32 = arith.constant 0 : i32
    %c0_i32_0 = arith.constant 0 : i32
    %c0_i32_1 = arith.constant 0 : i32
    return %arg0, %c0_i32, %c0_i32_0 : i32, i32, i32
  }
  func.func @transform_1(%arg0: i32) -> (i32, i32) {
    %c0_i32 = arith.constant 0 : i32
    %c0_i32_0 = arith.constant 0 : i32
    %c0_i32_1 = arith.constant 0 : i32
    return %c0_i32, %c0_i32_0 : i32, i32
  }
  func.func @transform_2(%arg0: i32) -> (i32, i32, i32) {
    %c0_i32 = arith.constant 0 : i32
    %c0_i32_0 = arith.constant 0 : i32
    %c0_i32_1 = arith.constant 0 : i32
    return %arg0, %c0_i32, %c0_i32_0 : i32, i32, i32
  }
}

</mosaic_0001>

<bundles_post_ra>
// kernel: tpu_custom_call.1
= control target key start
LH: loop header
LB: loop body
LE: loop exit
PB: predicated region body
PF: predicated region fallthrough
CT: control target
= control target key end

     0   :  { %7 = vsyncpa [#allocation4], 0  ;;  %s1371_s0 = inlined_call_operand.hbm [shape: f32[8,16,16], index: 0, kind: input, shape index: {}]   ;;  %s1372_s1 = inlined_call_operand.hbm [shape: f32[16,16], index: 1, kind: input, shape index: {}]   ;;  %s1373_s2 = inlined_call_operand.hbm [shape: f32[8,16,16], index: 2, kind: output, shape index: {}]  }
   0x1   :  { %9 = vsyncpa [#allocation4 + $0x1], 0 }
   0x2   :  { %10 = vsyncpa [#allocation7], 0 }
   0x3   :  { %11 = vsyncpa [#allocation5], 0 }
   0x4   :  { %13 = vsyncpa [#allocation5 + $0x1], 0  ;;  %s1155_s9 = smov 0   ;;  %s1157_s10 = smov 0  }
   0x5   :  { %s1159_s11 = smov 0   ;;  %s1161_s12 = smov 0  }
   0x6 LB: > { %s1176_s13 = sadd.s32 4294967295, %s1130_s12   ;;  %s822_s14 = sadd.s32 4294967294, %s1130_s12   ;;  %s1130_s12 = sphi %s1161_s12, %s1392_s12   ;;  %s1126_s11 = sphi %s1159_s11, %s1391_s11   ;;  %s1122_s10 = sphi %s1157_s10, %s1390_s10   ;;  %s1118_s9 = sphi %s1155_s9, %s1389_s9  }
   0x7   : > { %p39_p0 = scmp.ne.s32.totalorder %s1122_s10, %s1118_s9  ;;  %p1374_p1 = scmp.eq.s32.totalorder %s1176_s13, 0 }
   0x8   : > { %p90_p3 = scmp.eq.s32.totalorder %s822_s14, 7  ;;  %p823_p5 = scmp.ge.s32.totalorder %s1130_s12, 1 }
   0x9   : > { %p1185_p4 = por %p1374_p1, %p39_p0  ;;  %p97_p7 = scmp.lt.s32.totalorder %s1130_s12, 9 }
   0xa   : > { %p1190_p6 = por %p90_p3, %p39_p0  ;;  %s1132_s18 = smov [#allocation6]  }
   0xb   : > { %s1377_s15 = scalar_select %p1185_p4, 1, 0 }
   0xc   : > { %s1378_s16 = scalar_select %p1190_p6, 1, 0 }
   0xd   : > { %p1195_p8 = pnand %p823_p5, %p97_p7  ;;  %s109_s19 = sshll.u32 %s1132_s18, 4  ;;  %s110_s19 = int_to_ptr.vmem [resolvable:$true] %s109_s19 }
   0xe   : > { %s1208_s21 = sadd.s32 1, %s1130_s12   ;;  %s26_s22 = sadd.s32 1, %s1126_s11 }
   0xf   : > { %s1379_s17 = scalar_select %p1195_p8, 1, 0 }
  0x10   : > { %p948_p9 = pneg %p1195_p8  ;;  %s23_s23 = ssub.s32 %s1130_s12, %s1208_s21 }
  0x11   : > { %s1002_s26 = scalar_lea.hbm %s1372_s1, 256 }
  0x12   : > { %p1203_p10 = pnand %p948_p9, %p1374_p1  ;;  %p1003_p11 = scmp.ne.s32.totalorder %s1372_s1, %s1002_s26 }
  0x13   : > { %p1009_p3 = scmp.lt.u32.totalorder %s1002_s26, %s1372_s1 }
  0x14   : > { %p1004_p12 = pneg %p1203_p10 }
  0x16   : > { %p1005_p13 = pnand %p1004_p12, %p1003_p11 }
  0x18   : > { %p1006_p0 = pneg %p1005_p13 }
  0x1a   : > { %p1011_p5 = pnand %p1009_p3, %p1006_p0 }
  0x1c   : > { %1014 = shalt.err (!%p1011_p5)
}
  0x1d   : > { %s1015_s3 = scalar_lea.vmem %s110_s19, 256  ;;  %p1023_p2 = scmp.lt.s32.totalorder %s110_s19, %s110_s19 }
  0x1e   : > { %p1016_p7 = scmp.ne.s32.totalorder %s110_s19, %s1015_s3  ;;  %p1024_p6 = scmp.lt.s32.totalorder %s1015_s3, %s1015_s3 }
  0x20   : > { %p1018_p9 = pnand %p1016_p7, %p1004_p12  ;;  %p1025_p4 = por %p1024_p6, %p1023_p2 }
  0x22   : > { %p1019_p1 = pneg %p1018_p9 }
  0x24   : > { %p1026_p8 = pnand %p1025_p4, %p1019_p1 }
  0x26   : > { %1029 = shalt.err (!%p1026_p8)
}
  0x27   : > { %s1133_s4 = smov 128   ;;  %s1134_s5 = smov 8  }
  0x28   : > { %951 = dma.hbm_to_vmem [thread:$0]  (!%p1203_p10), %s1372_s1, 256, %s110_s19, [#allocation7], %s1133_s4, %s1133_s4, %s1134_s5  }
  0x29   : > { %p24_p1 = scmp.eq.s32.totalorder %s23_s23, 0  ;;  %p33_p2 = scmp.ne.s32.totalorder %s1126_s11, %s1122_s10 }
  0x2a   : > { %p34_p4 = scmp.eq.s32.totalorder %s1130_s12, 0  ;;  %p961_p6 = scmp.lt.s32.totalorder %s1130_s12, 8 }
  0x2b   : > { %s1237_s8 = scalar_select %p24_p1, %s1126_s11, %s26_s22  }
  0x2c   : > { %p35_p8 = por %p34_p4, %p33_p2  ;;  %p1381_p11 = scmp.eq.s32.totalorder %s1176_s13, 7 }
  0x2d   : > { %s123_s18 = sand.u32 1, %s1126_s11   ;;  %s838_s20 = sshll.u32 %s1130_s12, 8 }
  0x2e   : > { %p1241_p12 = por %p1381_p11, %p33_p2  ;;  %s826_s24 = sshll.u32 %s123_s18, 4 }
  0x2f   : > { %s1250_s27 = scalar_lea.hbm %s1371_s0, %s838_s20  ;;  %s127_s19 = scalar_lea.vmem [#allocation3], %s826_s24 }
  0x30   : > { %s134_s22 = sshll.u32 %s127_s19, 4  ;;  %p1252_p10 = pnand %p961_p6, %p35_p8  ;;  %s1256_s22 = int_to_ptr.vmem [resolvable:$true] %s134_s22 }
  0x31   : > { %s1258_s28 = scalar_lea.sflag [#allocation4], %s123_s18  ;;  %s1030_s29 = scalar_lea.hbm %s1250_s27, 256 }
  0x32   : > { %p1031_p13 = scmp.ne.s32.totalorder %s1250_s27, %s1030_s29  ;;  %p1032_p0 = pneg %p1252_p10 }
  0x33   : > { %s1035_s6 = scalar_lea.hbm %s1371_s0, 2048  ;;  %p1036_p7 = scmp.lt.u32.totalorder %s1250_s27, %s1371_s0 }
  0x34   : > { %p1033_p3 = pnand %p1032_p0, %p1031_p13  ;;  %p1037_p9 = scmp.lt.u32.totalorder %s1035_s6, %s1030_s29 }
  0x35   : > { %p1039_p2 = scmp.lt.u32.totalorder %s1030_s29, %s1250_s27 }
  0x36   : > { %p1034_p5 = pneg %p1033_p3  ;;  %p1038_p1 = por %p1037_p9, %p1036_p7 }
  0x38   : > { %p1040_p4 = por %p1039_p2, %p1038_p1 }
  0x3a   : > { %p1041_p6 = pnand %p1040_p4, %p1034_p5 }
  0x3c   : > { %1044 = shalt.err (!%p1041_p6)
}
  0x3d   : > { %s1045_s18 = scalar_lea.vmem %s1256_s22, 256  ;;  %s1135_s24 = smov [#allocation3]  }
  0x3e   : > { %p1046_p8 = scmp.ne.s32.totalorder %s1256_s22, %s1045_s18  ;;  %s1050_s25 = sshll.u32 %s1135_s24, 4  ;;  %s1051_s25 = int_to_ptr.vmem [resolvable:$false] %s1050_s25 }
  0x3f   : > { %s1052_s26 = scalar_lea.vmem %s1051_s25, 512  ;;  %p1053_p3 = scmp.lt.s32.totalorder %s1256_s22, %s1051_s25 }
  0x40   : > { %p1048_p11 = pnand %p1046_p8, %p1032_p0  ;;  %p1054_p7 = scmp.lt.s32.totalorder %s1052_s26, %s1045_s18 }
  0x42   : > { %p1049_p13 = pneg %p1048_p11  ;;  %p1055_p9 = por %p1054_p7, %p1053_p3 }
  0x44   : > { %p1056_p1 = pnand %p1055_p9, %p1049_p13 }
  0x46   : > { %1059 = shalt.err (!%p1056_p1)
}
  0x47   : > { %955 = dma.hbm_to_vmem [thread:$0]  (!%p1252_p10), %s1250_s27, 256, %s1256_s22, %s1258_s28, %s1133_s4, %s1133_s4, %s1134_s5  }
  0x48   : > { %p1384_p0 = scmp.ne.s32.totalorder %s1379_s17, 0 }
  0x49   : > { %s1292_s19 = sand.u32 (!%p1384_p0), 1, %s1122_s10   ;;  %p1385_p5 = scmp.ne.s32.totalorder (!%p1384_p0), %s1377_s15, 0 }
  0x4a   : > { %146 = sbr.rel (%p1384_p0) target bundleno = 365 (0x16d), region = 28  ;;  %s830_s29 = sshll.u32 (!%p1384_p0), %s1292_s19, 4 }
  0x4b   : > { %s149_s30 = scalar_lea.sflag (!%p1384_p0), [#allocation4], %s1292_s19  ;;  %s152_s23 = scalar_lea.vmem (!%p1384_p0), [#allocation3], %s830_s29 }
  0x51   : > { %1105 = dma.done.wait (%p1385_p5), %s149_s30, 256  }
  0x52   : > { %1107 = vsyncadd (%p1385_p5), %s149_s30, 4294967040  ;;  %p1386_p10 = scmp.eq.s32.totalorder %s1176_s13, 0 }
  0x54   : > { %1109 = dma.done.wait (%p1386_p10), [#allocation7], 256   ;;  %p1387_p2 = pmov %p1386_p10 }
  0x55   : > { %vm177_vm0 = vcmask 123904   ;;  %v1136_v0 = vmov 0.0   ;;  %vm182_vm1 = vcmask 130048   ;;  %v213_v1 = vld [vmem:[#allocation6] sm:$0xff]  ;;  %v214_v2 = vld [vmem:[#allocation6 + $0x8] sm:$0xff]  ;;  %s176_s15 = scalar_lea.vmem [#allocation8], %s830_s29 }
  0x56   : > { %1111 = vsyncadd (%p1387_p2), [#allocation7], 4294967040  ;;  %178 = vst.msk [vmem:[#allocation2] sm:$0x3] %vm177_vm0, %v1136_v0  ;;  %v180_v3 = vld [vmem:[%s152_s23] sm:$0xff]  ;;  %v222_v4 = vand.u32 4294901760, %v213_v1 }
  0x57   : > { %179 = vst.msk [vmem:[#allocation2 + $0x12] sm:$0x3] %vm177_vm0, %v1136_v0  ;;  %v225_v5 = vand.u32 4294901760, %v214_v2  ;;  %v181_v6 = vld [vmem:[%s152_s23 + $0x8] sm:$0xff]  ;;  %s739_s17 = sshll.u32 %s176_s15, 4  ;;  %s839_s4 = sshll.u32 %s1176_s13, 8  ;;  %s1321_s17 = int_to_ptr.vmem [resolvable:$true] %s739_s17 }
  0x58   : > { %183 = vst.msk [vmem:[#allocation2 + $0x2] sm:$0xff] %vm182_vm1, %v180_v3  ;;  %184 = vst.msk [vmem:[#allocation2 + $0xa] sm:$0xff] %vm182_vm1, %v181_v6  ;;  %v310_v8 = vsub.f32 %v213_v1, %v222_v4  ;;  %s1326_s22 = scalar_lea.hbm %s1373_s2, %s839_s4  ;;  %s726_s28 = scalar_lea.sflag [#allocation5], %s1292_s19 }
  0x59   : > { %v1308_v7 = vpack.c.bf16 %v225_v5, %v222_v4  ;;  %v317_v9 = vsub.f32 %v214_v2, %v225_v5  ;;  %s1060_s13 = scalar_lea.vmem %s1321_s17, 256  ;;  %s1137_s3 = smov [#allocation8]  }
  0x5a   : > { %v311_v10 = vand.u32 4294901760, %v310_v8  ;;  %p1061_p4 = scmp.ne.s32.totalorder %s1321_s17, %s1060_s13  ;;  %s1064_s6 = sshll.u32 %s1137_s3, 4  ;;  %s1065_s6 = int_to_ptr.vmem [resolvable:$false] %s1064_s6 }
  0x5b   : > { %919 = vmatprep.subr.bf16.mxu0 %v1308_v7  ;;  %907 = vmatprep.subr.bf16.mxu1 %v1308_v7  ;;  %v318_v11 = vand.u32 4294901760, %v317_v9  ;;  %v914_v58 = vpack.c.bf16 %v317_v9, %v310_v8  ;;  %s1066_s7 = scalar_lea.vmem %s1065_s6, 512  ;;  %p1067_p11 = scmp.lt.s32.totalorder %s1321_s17, %s1065_s6 }
  0x5c   : > { %921 = vmatpush3.bf16.msra.mxu0 %v1308_v7  ;;  %909 = vmatpush3.bf16.msra.mxu1 %v1308_v7  ;;  %v312_v12 = vsub.f32 %v310_v8, %v311_v10  ;;  %p1062_p6 = pnand %p1061_p4, %p1241_p12  ;;  %p1068_p13 = scmp.lt.s32.totalorder %s1066_s7, %s1060_s13 }
  0x5d   : > { %v319_v13 = vsub.f32 %v317_v9, %v318_v11  ;;  %v922_v14 = vpack.c.bf16 %v318_v11, %v311_v10 }
  0x5e   : > { %v313_v24 = vand.u32 4294901760, %v312_v12  ;;  %p1063_p8 = pneg %p1062_p6  ;;  %p1069_p3 = por %p1068_p13, %p1067_p11 }
  0x5f   : > { %v185_v15 = vld [vmem:[#allocation2] sm:$0xff]  ;;  %923 = vmatprep.subr.bf16.mxu0 %v922_v14  ;;  %v186_v23 = vld [vmem:[#allocation2 + $0x8] sm:$0xff]  ;;  %v320_v25 = vand.u32 4294901760, %v319_v13 }
  0x60   : > { %v189_v16 = vld [vmem:[#allocation2 + $0x1] sm:$0xff]  ;;  %v187_v18 = vmul.f32 0.05448869, %v185_v15  ;;  %v188_v28 = vmul.f32 0.05448869, %v186_v23  ;;  %v190_v29 = vld [vmem:[#allocation2 + $0x9] sm:$0xff]  ;;  %p1070_p7 = pnand %p1069_p3, %p1063_p8 }
  0x61   : > { %v195_v17 = vld [vmem:[#allocation2 + $0x2] sm:$0xff]  ;;  %v191_v19 = vmul.f32 0.24420136, %v189_v16  ;;  %v196_v30 = vld [vmem:[#allocation2 + $0xa] sm:$0xff]  ;;  %v910_v32 = vpack.c.bf16 %v320_v25, %v313_v24  ;;  %v192_v35 = vmul.f32 0.24420136, %v190_v29 }
  0x62   : > { %v197_v20 = vmul.f32 0.40261996, %v195_v17  ;;  %v201_v21 = vld [vmem:[#allocation2 + $0x3] sm:$0xff]  ;;  %v202_v31 = vld [vmem:[#allocation2 + $0xb] sm:$0xff]  ;;  %v198_v36 = vmul.f32 0.40261996, %v196_v30 }
  0x63   : > { %v207_v22 = vld [vmem:[#allocation2 + $0x4] sm:$0xff]  ;;  %v193_v26 = vadd.f32 %v191_v19, %v187_v18  ;;  %v203_v27 = vmul.f32 0.24420136, %v201_v21  ;;  %v208_v37 = vld [vmem:[#allocation2 + $0xc] sm:$0xff]  ;;  %911 = vmatprep.subr.bf16.mxu1 %v910_v32  ;;  %v194_v39 = vadd.f32 %v192_v35, %v188_v28  ;;  %v204_v40 = vmul.f32 0.24420136, %v202_v31 }
  0x64   : > { %v209_v34 = vmul.f32 0.05448869, %v207_v22  ;;  %v210_v43 = vmul.f32 0.05448869, %v208_v37 }
  0x65   : > { %v199_v33 = vadd.f32 %v197_v20, %v193_v26  ;;  %v200_v42 = vadd.f32 %v198_v36, %v194_v39 }
  0x67   : > { %v205_v38 = vadd.f32 %v203_v27, %v199_v33  ;;  %v206_v45 = vadd.f32 %v204_v40, %v200_v42 }
  0x69   : > { %v211_v41 = vadd.f32 %v209_v34, %v205_v38  ;;  %v212_v47 = vadd.f32 %v210_v43, %v206_v45 }
  0x6b   : > { %v216_v44 = vsel %vm182_vm1, %v211_v41, 0  ;;  %v219_v49 = vsel %vm182_vm1, %v212_v47, 0 }
  0x6c   : > { %v288_v46 = vand.u32 4294901760, %v216_v44  ;;  %v298_v51 = vand.u32 4294901760, %v219_v49 }
  0x6e   : > { %v289_v48 = vsub.f32 %v216_v44, %v288_v46  ;;  %v299_v52 = vsub.f32 %v219_v49, %v298_v51 }
  0x70   : > { %v290_v50 = vand.u32 4294901760, %v289_v48  ;;  %v300_v54 = vand.u32 4294901760, %v299_v52 }
  0x72   : > { %889 = vmatprep.mubr.f32.mxu0 %v290_v50  ;;  %v291_v53 = vsub.f32 %v289_v48, %v290_v50  ;;  %v301_v56 = vsub.f32 %v299_v52, %v300_v54 }
  0x73   : > { %890 = vmatmul.mubr.f32.vlgmr.msra.gmra.mrb[0].mxu0 %v300_v54 }
  0x74   : > { %v292_v55 = vand.u32 4294901760, %v291_v53  ;;  %925 = vmatpush3.bf16.msra.mxu0 %v922_v14  ;;  %896 = vmatprep.mubr.f32.mxu0 %v288_v46  ;;  %v302_v57 = vand.u32 4294901760, %v301_v56 }
  0x75   : > { %927 = vmatprep.subr.bf16.mxu0 %v1308_v7 }
  0x76   : > { %868 = vmatprep.mubr.f32.mxu1 %v292_v55 }
  0x77   : > { %869 = vmatmul.mubr.f32.vlgmr.msra.gmra.mrb[0].mxu1 %v302_v57 }
  0x78   : > { %913 = vmatpush3.bf16.msra.mxu1 %v910_v32  ;;  %875 = vmatprep.mubr.f32.mxu1 %v288_v46 }
  0x79   : > { %915 = vmatprep.subr.bf16.mxu1 %v914_v58 }
  0x7b   : > { %897 = vmatmul.mubr.f32.vlgmr.msra.gmra.mrb[0].mxu0 %v298_v51 }
  0x7c   : > { %929 = vmatpush3.bf16.msra.mxu0 %v1308_v7  ;;  %903 = vmatprep.mubr.f32.mxu0 %v288_v46 }
  0x7f   : > { %876 = vmatmul.mubr.f32.vlgmr.msra.gmra.mrb[0].mxu1 %v298_v51 }
  0x80   : > { %917 = vmatpush3.bf16.msra.mxu1 %v914_v58  ;;  %882 = vmatprep.mubr.f32.mxu1 %v289_v48 }
  0x83   : > { %904 = vmatmul.mubr.f32.vlgmr.msra.gmra.mrb[0].mxu0 %v298_v51 }
  0x87   : > { %883 = vmatmul.mubr.f32.vlgmr.msra.gmra.mrb[0].mxu1 %v299_v52 }
 0x156   : > { %v905_v59 = vpop.f32.mrb[0].mxu0 }
 0x157   : > { %v713_v60 = vpop.f32.mrb[1].mxu0 }
 0x15a   : > { %v884_v61 = vpop.f32.mrb[0].mxu1 }
 0x15b   : > { %v930_v62 = vadd.f32 %v905_v59, %v884_v61  ;;  %v467_v63 = vpop.f32.mrb[1].mxu1 }
 0x15c   : > { %v931_v0 = vadd.f32 %v713_v60, %v467_v63 }
 0x15d   : > { %724 = vst.msk [vmem:[%s176_s15 + $0x8] sm:$0xff] %vm182_vm1, %v930_v62 }
 0x15e   : > { %723 = vst.msk [vmem:[%s176_s15] sm:$0xff] %vm182_vm1, %v931_v0 }
 0x15f   : > { %1073 = shalt.err (!%p1070_p7)
}
 0x160   : > { %s1074_s20 = scalar_lea.hbm %s1326_s22, 256  ;;  %s1078_s25 = scalar_lea.hbm %s1373_s2, 2048 }
 0x161   : > { %p1075_p9 = scmp.ne.s32.totalorder %s1326_s22, %s1074_s20  ;;  %p1079_p5 = scmp.lt.u32.totalorder %s1326_s22, %s1373_s2 }
 0x162   : > { %p1080_p10 = scmp.lt.u32.totalorder %s1078_s25, %s1074_s20  ;;  %p1082_p4 = scmp.lt.u32.totalorder %s1074_s20, %s1326_s22 }
 0x163   : > { %p1076_p1 = pnand %p1075_p9, %p1241_p12 }
 0x164   : > { %p1081_p2 = por %p1080_p10, %p1079_p5 }
 0x165   : > { %p1077_p0 = pneg %p1076_p1 }
 0x166   : > { %p1083_p6 = por %p1082_p4, %p1081_p2 }
 0x168   : > { %p1084_p8 = pnand %p1083_p6, %p1077_p0 }
 0x16a   : > { %1087 = shalt.err (!%p1084_p8)
}
 0x16b   : > { %s1138_s30 = smov 128   ;;  %s1139_s23 = smov 8  }
 0x16c   : > { %946 = dma.vmem_to_hbm [thread:$0]  (%p1241_p12), %s1321_s17, 256, %s1326_s22, %s726_s28, %s1138_s30, %s1138_s30, %s1139_s23  }
 0x16d PF: > { %p963_p11 = scmp.ge.s32.totalorder %s1130_s12, 2  ;;  %s754_s15 = sand.u32 1, %s1118_s9  }
 0x16e   : > { %p1388_p13 = scmp.ne.s32.totalorder %s1378_s16, 0  ;;  %s755_s4 = scalar_lea.sflag [#allocation5], %s754_s15 }
 0x170   : > { %p957_p3 = pnand %p963_p11, %p1388_p13 }
 0x172   : > { %1113 = dma.done.wait (!%p957_p3), %s755_s4, 256  }
 0x173   : > { %1115 = vsyncadd (!%p957_p3), %s755_s4, 4294967040  ;;  %p16_p7 = scmp.ge.s32.totalorder %s1208_s21, 10   ;;  %s1389_s9 = smov %s1122_s10 }
 0x174   : > { %s1390_s10 = smov %s1126_s11  ;;  %s1391_s11 = smov %s1237_s8 }
 0x175   : > { %s1392_s12 = smov %s1208_s21  ;;  %18 = sbr.rel (!%p16_p7) target bundleno = 6 (0x6), region = 77 }
 0x17c   :  { %760 = vsyncpa [#allocation4], 1 }
 0x17d   :  { %762 = vsyncpa [#allocation4 + $0x1], 1 }
 0x17e   :  { %763 = vsyncpa [#allocation7], 1 }
 0x17f   :  { %764 = vsyncpa [#allocation5], 1 }
 0x180   :  { %766 = vsyncpa [#allocation5 + $0x1], 1 }

</bundles_post_ra>
